<compile_context>
chip_gen: v5e
topology: v5e:2x2
jax: 0.10.0
libtpu: 0.0.40
codegen_flags: <defaults>
</compile_context>

<pallas_src>
import jax
import jax.numpy as jnp
from jax import lax
from jax.experimental import pallas as pl
from jax.experimental.pallas import tpu as pltpu


# --------------------------------------------------------------------------- #
# Kernels
# --------------------------------------------------------------------------- #
def encoder_kernel(t_ref, s_ref, k_ref, lab_ref,
                   w1_ref, w2_ref, w3_ref, b_ref, corr_ref, out_ref):
    # t/s/k_ref : (bn, De) row-blocks of teacher/student/kc embeddings
    # w1/w2/w3  : (De, E) split input_encoder weight (t@W1 + s@W2 + k@W3 == concat@W)
    # b_ref     : (1, E); lab_ref: (bn, 1) int32; corr_ref: (2, E)
    text = jnp.tanh(
        jnp.dot(t_ref[...], w1_ref[...], preferred_element_type=jnp.float32)
        + jnp.dot(s_ref[...], w2_ref[...], preferred_element_type=jnp.float32)
        + jnp.dot(k_ref[...], w3_ref[...], preferred_element_type=jnp.float32)
        + b_ref[...]
    )
    lbl = jnp.maximum(lab_ref[...], 0)                       # clip(labels, min=0)
    cemb = jnp.where(lbl > 0, corr_ref[1:2, :], corr_ref[0:1, :])   # (bn, E)
    out_ref[...] = text + cemb


def lstm_kernel(x_ref, wih_ref, whh_ref, b_ref, out_ref, pre_sc, h_sc, c_sc):
    # Per-batch-element block (grid over B, "parallel" -> megacore on v7x).
    # x_ref  : (T, E)      inputs for this sequence
    # wih/whh: (E, 4E)     b_ref: (1, 4E)  (b_ih + b_hh, PyTorch gate order i,f,g,o)
    # out_ref: (T, 1, E)   hidden states (leading-axis T -> clean dynamic stores)
    # pre_sc : (T, 4E)     hoisted input projection; h_sc/c_sc: (1, E) state
    T, E = x_ref.shape

    # Hoist x @ W_ih off the serial critical path: one MXU matmul for all steps.
    pre_sc[...] = (
        jnp.dot(x_ref[...], wih_ref[...], preferred_element_type=jnp.float32)
        + b_ref[...]
    )
    h_sc[...] = jnp.zeros_like(h_sc)
    c_sc[...] = jnp.zeros_like(c_sc)

    def step(t, carry):
        gates = pre_sc[pl.ds(t, 1), :] + jnp.dot(
            h_sc[...], whh_ref[...], preferred_element_type=jnp.float32)   # (1, 4E)
        i = jax.nn.sigmoid(gates[:, 0 * E:1 * E])
        f = jax.nn.sigmoid(gates[:, 1 * E:2 * E])
        g = jnp.tanh(gates[:, 2 * E:3 * E])
        o = jax.nn.sigmoid(gates[:, 3 * E:4 * E])
        c = f * c_sc[...] + i * g
        h = o * jnp.tanh(c)
        c_sc[...] = c
        h_sc[...] = h
        out_ref[t] = h                                       # leading-axis store
        return carry

    # Short static trip count -> unroll so the LLO scheduler can overlap steps.
    lax.fori_loop(0, T, step, 0, unroll=True)


def readout_kernel(h_ref, wf_ref, bf_ref, y_ref):
    # h_ref: (bn, E); wf_ref: (E, Kp); bf_ref: (1, Kp)  (fused W_out @ kc^T, padded)
    y_ref[...] = jax.nn.sigmoid(
        jnp.dot(h_ref[...], wf_ref[...], preferred_element_type=jnp.float32)
        + bf_ref[...]
    )


# --------------------------------------------------------------------------- #
# Wrappers
# --------------------------------------------------------------------------- #
def _pick_row_block(n, target):
    bn = min(target, n)
    if n >= 8:
        bn = max(8, (bn // 8) * 8)
        while bn > 0 and n % bn:
            bn -= 8
        if bn <= 0:
            return n
        return bn
    return n


def _compiler_params():
    return pltpu.CompilerParams(
        dimension_semantics=("parallel",),
        vmem_limit_bytes=32 * 1024 * 1024,   # fits the v7x 64 MiB budget comfortably
    )


def _forward_pass(params, batch, *, row_block=256):
    teacher = batch["teacher_embs"]          # (B, T, De)
    student = batch["student_embs"]          # (B, T, De)
    kc = batch["kc_embs"]                    # (B, T, De)
    labels = batch["labels"]                 # (B, T) int in {-1, 0, 1}

    B, T, De = teacher.shape
    E = params["w_ih"].shape[0]
    K = params["num_kcs"]
    Kp = params["w_fused"].shape[1]
    N = B * T
    bn = _pick_row_block(N, row_block)
    grid_n = N // bn if N % bn == 0 else 1
    if N % bn:
        bn = N

    t2 = teacher.reshape(N, De)
    s2 = student.reshape(N, De)
    k2 = kc.reshape(N, De)
    lab2 = labels.reshape(N, 1).astype(jnp.int32)

    # --- input encoder + correctness embedding (tiled over N, parallel) -------
    xemb = pl.pallas_call(
        encoder_kernel,
        out_shape=jax.ShapeDtypeStruct((N, E), jnp.float32),
        grid=(grid_n,),
        in_specs=[
            pl.BlockSpec((bn, De), lambda i: (i, 0)),
            pl.BlockSpec((bn, De), lambda i: (i, 0)),
            pl.BlockSpec((bn, De), lambda i: (i, 0)),
            pl.BlockSpec((bn, 1), lambda i: (i, 0)),
            pl.BlockSpec((De, E), lambda i: (0, 0)),
            pl.BlockSpec((De, E), lambda i: (0, 0)),
            pl.BlockSpec((De, E), lambda i: (0, 0)),
            pl.BlockSpec((1, E), lambda i: (0, 0)),
            pl.BlockSpec((2, E), lambda i: (0, 0)),
        ],
        out_specs=pl.BlockSpec((bn, E), lambda i: (i, 0)),
        compiler_params=_compiler_params(),
    )(t2, s2, k2, lab2,
      params["w_in1"], params["w_in2"], params["w_in3"],
      params["b_in"], params["corr_emb"])

    # dropout_layer -> eval-mode identity (deterministic)

    # --- LSTM: grid over batch (parallel), hoisted input projection -----------
    x_bte = xemb.reshape(B, T, E)                            # free reshape, no transpose
    h4 = pl.pallas_call(
        lstm_kernel,
        out_shape=jax.ShapeDtypeStruct((B, T, 1, E), jnp.float32),
        grid=(B,),
        in_specs=[
            pl.BlockSpec((None, T, E), lambda b: (b, 0, 0)),
            pl.BlockSpec((E, 4 * E), lambda b: (0, 0)),
            pl.BlockSpec((E, 4 * E), lambda b: (0, 0)),
            pl.BlockSpec((1, 4 * E), lambda b: (0, 0)),
        ],
        out_specs=pl.BlockSpec((None, T, 1, E), lambda b: (b, 0, 0, 0)),
        scratch_shapes=[
            pltpu.VMEM((T, 4 * E), jnp.float32),   # hoisted pre-gates
            pltpu.VMEM((1, E), jnp.float32),       # h state
            pltpu.VMEM((1, E), jnp.float32),       # c state
        ],
        compiler_params=_compiler_params(),
    )(x_bte, params["w_ih"], params["w_hh"], params["b_lstm"])

    # dropout_layer -> eval-mode identity (deterministic)

    # --- fused readout: sigmoid(h @ (W_out @ kc^T) + b_out @ kc^T), lane-dense -
    h2 = h4.reshape(N, E)                                    # free reshape, no transpose
    y_pad = pl.pallas_call(
        readout_kernel,
        out_shape=jax.ShapeDtypeStruct((N, Kp), jnp.float32),
        grid=(grid_n,),
        in_specs=[
            pl.BlockSpec((bn, E), lambda i: (i, 0)),
            pl.BlockSpec((E, Kp), lambda i: (0, 0)),
            pl.BlockSpec((1, Kp), lambda i: (0, 0)),
        ],
        out_specs=pl.BlockSpec((bn, Kp), lambda i: (i, 0)),
        compiler_params=_compiler_params(),
    )(h2, params["w_fused"], params["b_fused"])

    y = y_pad[:, :K].reshape(B, T, K)
    return x_bte, y


def dkt_sem_cl_forward(params, batch, *, row_block=256):
    # DKTSemCL.forward runs _forward_pass twice; with eval-mode (identity) dropout
    # both passes are bit-identical, so compute once and reuse for both views.
    xemb, y = _forward_pass(params, batch, row_block=row_block)
    return (xemb, y), (xemb, y)


# --------------------------------------------------------------------------- #
# Parameters: raw module-style params + one-time kernel-ready preparation
# --------------------------------------------------------------------------- #
def init_params(key, emb_size, text_emb_size, num_kcs):
    ks = jax.random.split(key, 9)
    s = 0.1
    return {
        "kc_emb_matrix": jax.random.normal(ks[0], (num_kcs, text_emb_size), jnp.float32),
        # input_encoder = Linear(3*text_emb, emb) + Tanh  (weight stored transposed)
        "w_in": jax.random.normal(ks[1], (3 * text_emb_size, emb_size), jnp.float32) * s,
        "b_in": jax.random.normal(ks[2], (1, emb_size), jnp.float32) * s,
        # correctness_encoder = Embedding(2, emb)
        "corr_emb": jax.random.normal(ks[3], (2, emb_size), jnp.float32) * s,
        # LSTM(emb, emb), gate order i,f,g,o; weights transposed (E, 4E)
        "w_ih": jax.random.normal(ks[4], (emb_size, 4 * emb_size), jnp.float32) * s,
        "w_hh": jax.random.normal(ks[5], (emb_size, 4 * emb_size), jnp.float32) * s,
        "b_lstm": jax.random.normal(ks[6], (1, 4 * emb_size), jnp.float32) * s,  # b_ih+b_hh
        # out_layer = Linear(emb, text_emb)
        "w_out": jax.random.normal(ks[7], (emb_size, text_emb_size), jnp.float32) * s,
        "b_out": jax.random.normal(ks[8], (1, text_emb_size), jnp.float32) * s,
    }


def prepare_params(raw):
    """One-time preprocessing: split W_in, fuse out_layer with kc_emb_matrix.T."""
    De = raw["kc_emb_matrix"].shape[1]
    K = raw["kc_emb_matrix"].shape[0]
    Kp = ((K + 127) // 128) * 128
    kc_t = raw["kc_emb_matrix"].T                           # (De, K)
    w_fused = raw["w_out"] @ kc_t                           # (E, K)
    b_fused = raw["b_out"] @ kc_t                           # (1, K)
    w_fused = jnp.pad(w_fused, ((0, 0), (0, Kp - K)))       # lane-dense output
    b_fused = jnp.pad(b_fused, ((0, 0), (0, Kp - K)))
    return {
        "w_in1": raw["w_in"][:De],
        "w_in2": raw["w_in"][De:2 * De],
        "w_in3": raw["w_in"][2 * De:],
        "b_in": raw["b_in"],
        "corr_emb": raw["corr_emb"],
        "w_ih": raw["w_ih"],
        "w_hh": raw["w_hh"],
        "b_lstm": raw["b_lstm"],
        "w_fused": w_fused,
        "b_fused": b_fused,
        "num_kcs": K,
    }


# --------------------------------------------------------------------------- #
# Pure-JAX reference (unfused) for correctness validation
# --------------------------------------------------------------------------- #
def _reference_forward(raw, batch):
    teacher, student, kc = batch["teacher_embs"], batch["student_embs"], batch["kc_embs"]
    labels = batch["labels"]
    B, T, De = teacher.shape
    E = raw["w_ih"].shape[0]
    x = jnp.concatenate([teacher, student, kc], axis=2)
    text = jnp.tanh(x @ raw["w_in"] + raw["b_in"])
    cemb = raw["corr_emb"][jnp.clip(labels, 0)]
    xemb = text + cemb

    def cell(carry, xt):
        h, c = carry
        gates = xt @ raw["w_ih"] + h @ raw["w_hh"] + raw["b_lstm"]
        i = jax.nn.sigmoid(gates[:, :E])
        f = jax.nn.sigmoid(gates[:, E:2 * E])
        g = jnp.tanh(gates[:, 2 * E:3 * E])
        o = jax.nn.sigmoid(gates[:, 3 * E:])
        c = f * c + i * g
        h = o * jnp.tanh(c)
        return (h, c), h

    h0 = jnp.zeros((B, E), jnp.float32)
    c0 = jnp.zeros((B, E), jnp.float32)
    _, hs = lax.scan(cell, (h0, c0), jnp.swapaxes(xemb, 0, 1))
    h = jnp.swapaxes(hs, 0, 1)                               # (B, T, E)
    hts = h @ raw["w_out"] + raw["b_out"]
    y = jax.nn.sigmoid(hts @ raw["kc_emb_matrix"].T)
    return xemb, y


# --------------------------------------------------------------------------- #
# Main
# --------------------------------------------------------------------------- #
if __name__ == "__main__":
    B, T = 2, 8
    EMB_SIZE = 32          # emb_size
    TEXT_EMB_SIZE = 32     # kc_emb_matrix.shape[1]
    NUM_KCS = 16           # kc_emb_matrix.shape[0]

    key = jax.random.PRNGKey(0)
    kp, kt, ks_, kk, kl = jax.random.split(key, 5)

    raw_params = init_params(kp, EMB_SIZE, TEXT_EMB_SIZE, NUM_KCS)
    params = prepare_params(raw_params)
    batch = {
        "teacher_embs": jax.random.normal(kt, (B, T, TEXT_EMB_SIZE), jnp.float32),
        "student_embs": jax.random.normal(ks_, (B, T, TEXT_EMB_SIZE), jnp.float32),
        "kc_embs": jax.random.normal(kk, (B, T, TEXT_EMB_SIZE), jnp.float32),
        "labels": jax.random.randint(kl, (B, T), -1, 2, dtype=jnp.int32),
    }

    # row_block=8 exercises the tiled (grid=(2,), parallel) encoder/readout path.
    (xemb1, y1), (xemb2, y2) = dkt_sem_cl_forward(params, batch, row_block=8)
    jax.block_until_ready((xemb1, y1, xemb2, y2))

    assert xemb1.shape == (B, T, EMB_SIZE)
    assert y1.shape == (B, T, NUM_KCS)
    assert jnp.all(jnp.isfinite(xemb1)) and jnp.all(jnp.isfinite(y1))

    # Validate against the unfused pure-JAX reference (loose tol: matmul precision).
    xemb_ref, y_ref = _reference_forward(raw_params, batch)
    assert jnp.allclose(xemb1, xemb_ref, atol=2e-2), "xemb mismatch vs reference"
    assert jnp.allclose(y1, y_ref, atol=2e-2), "y mismatch vs reference"

    print("KERNEL_OK")
</pallas_src>

<mosaic_0001>
module attributes {stable_mosaic.version = 11 : i64} {
  func.func @encoder_kernel(%arg0: i32, %arg1: memref<8x32xf32, #tpu.memory_space<vmem>>, %arg2: memref<8x32xf32, #tpu.memory_space<vmem>>, %arg3: memref<8x32xf32, #tpu.memory_space<vmem>>, %arg4: memref<8x1xi32, #tpu.memory_space<vmem>>, %arg5: memref<32x32xf32, #tpu.memory_space<vmem>>, %arg6: memref<32x32xf32, #tpu.memory_space<vmem>>, %arg7: memref<32x32xf32, #tpu.memory_space<vmem>>, %arg8: memref<1x32xf32, #tpu.memory_space<vmem>>, %arg9: memref<2x32xf32, #tpu.memory_space<vmem>>, %arg10: memref<8x32xf32, #tpu.memory_space<vmem>>) attributes {dimension_semantics = [#tpu.dimension_semantics<parallel>], iteration_bounds = array<i64: 2>, scalar_prefetch = 0 : i64, scratch_operands = 0 : i64, tpu.core_type = #tpu.core_type<tc>, window_params = [{transform_indices = @transform_0, window_bounds = array<i64: 8, 32>}, {transform_indices = @transform_1, window_bounds = array<i64: 8, 32>}, {transform_indices = @transform_2, window_bounds = array<i64: 8, 32>}, {transform_indices = @transform_3, window_bounds = array<i64: 8, 1>}, {pipeline_mode = #tpu.pipeline_mode<synchronous>, transform_indices = @transform_4, window_bounds = array<i64: 32, 32>}, {pipeline_mode = #tpu.pipeline_mode<synchronous>, transform_indices = @transform_5, window_bounds = array<i64: 32, 32>}, {pipeline_mode = #tpu.pipeline_mode<synchronous>, transform_indices = @transform_6, window_bounds = array<i64: 32, 32>}, {pipeline_mode = #tpu.pipeline_mode<synchronous>, transform_indices = @transform_7, window_bounds = array<i64: 1, 32>}, {pipeline_mode = #tpu.pipeline_mode<synchronous>, transform_indices = @transform_8, window_bounds = array<i64: 2, 32>}, {transform_indices = @transform_9, window_bounds = array<i64: 8, 32>}]} {
    %c0 = arith.constant 0 : index
    %c0_0 = arith.constant 0 : index
    %0 = vector.load %arg1[%c0, %c0_0] : memref<8x32xf32, #tpu.memory_space<vmem>>, vector<8x32xf32>
    %c0_1 = arith.constant 0 : index
    %c0_2 = arith.constant 0 : index
    %1 = vector.load %arg5[%c0_1, %c0_2] : memref<32x32xf32, #tpu.memory_space<vmem>>, vector<32x32xf32>
    %cst = arith.constant dense<0.000000e+00> : vector<8x32xf32>
    %2 = tpu.matmul %0, %1, %cst {dimension_numbers = #tpu.dot_dimension_numbers<[1], [0], [0], [1], [0, 0, 1, 1], [], []>} : vector<8x32xf32>, vector<32x32xf32>, vector<8x32xf32> -> vector<8x32xf32>
    %c0_3 = arith.constant 0 : index
    %c0_4 = arith.constant 0 : index
    %3 = vector.load %arg2[%c0_3, %c0_4] : memref<8x32xf32, #tpu.memory_space<vmem>>, vector<8x32xf32>
    %c0_5 = arith.constant 0 : index
    %c0_6 = arith.constant 0 : index
    %4 = vector.load %arg6[%c0_5, %c0_6] : memref<32x32xf32, #tpu.memory_space<vmem>>, vector<32x32xf32>
    %cst_7 = arith.constant dense<0.000000e+00> : vector<8x32xf32>
    %5 = tpu.matmul %3, %4, %cst_7 {dimension_numbers = #tpu.dot_dimension_numbers<[1], [0], [0], [1], [0, 0, 1, 1], [], []>} : vector<8x32xf32>, vector<32x32xf32>, vector<8x32xf32> -> vector<8x32xf32>
    %6 = arith.addf %2, %5 : vector<8x32xf32>
    %c0_8 = arith.constant 0 : index
    %c0_9 = arith.constant 0 : index
    %7 = vector.load %arg3[%c0_8, %c0_9] : memref<8x32xf32, #tpu.memory_space<vmem>>, vector<8x32xf32>
    %c0_10 = arith.constant 0 : index
    %c0_11 = arith.constant 0 : index
    %8 = vector.load %arg7[%c0_10, %c0_11] : memref<32x32xf32, #tpu.memory_space<vmem>>, vector<32x32xf32>
    %cst_12 = arith.constant dense<0.000000e+00> : vector<8x32xf32>
    %9 = tpu.matmul %7, %8, %cst_12 {dimension_numbers = #tpu.dot_dimension_numbers<[1], [0], [0], [1], [0, 0, 1, 1], [], []>} : vector<8x32xf32>, vector<32x32xf32>, vector<8x32xf32> -> vector<8x32xf32>
    %10 = arith.addf %6, %9 : vector<8x32xf32>
    %c0_13 = arith.constant 0 : index
    %c0_14 = arith.constant 0 : index
    %11 = vector.load %arg8[%c0_13, %c0_14] : memref<1x32xf32, #tpu.memory_space<vmem>>, vector<1x32xf32>
    %12 = vector.broadcast %11 : vector<1x32xf32> to vector<8x32xf32>
    %13 = arith.addf %10, %12 : vector<8x32xf32>
    %14 = math.tanh %13 : vector<8x32xf32>
    %c0_15 = arith.constant 0 : index
    %c0_16 = arith.constant 0 : index
    %15 = vector.load %arg4[%c0_15, %c0_16] : memref<8x1xi32, #tpu.memory_space<vmem>>, vector<8x1xi32>
    %c0_i32 = arith.constant 0 : i32
    %16 = vector.broadcast %c0_i32 : i32 to vector<8x1xi32>
    %17 = arith.maxsi %15, %16 : vector<8x1xi32>
    %c0_i32_17 = arith.constant 0 : i32
    %18 = vector.broadcast %c0_i32_17 : i32 to vector<8x1xi32>
    %19 = arith.cmpi sgt, %17, %18 : vector<8x1xi32>
    %c1 = arith.constant 1 : index
    %c0_18 = arith.constant 0 : index
    %20 = vector.load %arg9[%c1, %c0_18] : memref<2x32xf32, #tpu.memory_space<vmem>>, vector<1x32xf32>
    %c0_19 = arith.constant 0 : index
    %c0_20 = arith.constant 0 : index
    %21 = vector.load %arg9[%c0_19, %c0_20] : memref<2x32xf32, #tpu.memory_space<vmem>>, vector<1x32xf32>
    %22 = vector.shape_cast %19 : vector<8x1xi1> to vector<8x1xi1>
    %23 = vector.broadcast %22 : vector<8x1xi1> to vector<8x32xi1>
    %24 = vector.shape_cast %20 : vector<1x32xf32> to vector<1x32xf32>
    %25 = vector.broadcast %24 : vector<1x32xf32> to vector<8x32xf32>
    %26 = vector.shape_cast %21 : vector<1x32xf32> to vector<1x32xf32>
    %27 = vector.broadcast %26 : vector<1x32xf32> to vector<8x32xf32>
    %28 = arith.select %23, %25, %27 : vector<8x32xi1>, vector<8x32xf32>
    %29 = arith.addf %14, %28 : vector<8x32xf32>
    %c0_21 = arith.constant 0 : index
    %c0_22 = arith.constant 0 : index
    %30 = vector.load %arg10[%c0_21, %c0_22] : memref<8x32xf32, #tpu.memory_space<vmem>>, vector<8x32xf32>
    tpu.vector_store %arg10[%c0_21, %c0_22], %29 {strides = array<i32>} : memref<8x32xf32, #tpu.memory_space<vmem>>, vector<8x32xf32>,
    return
  }
  func.func @transform_0(%arg0: i32) -> (i32, i32) {
    %c0_i32 = arith.constant 0 : i32
    %c0_i32_0 = arith.constant 0 : i32
    return %arg0, %c0_i32 : i32, i32
  }
  func.func @transform_1(%arg0: i32) -> (i32, i32) {
    %c0_i32 = arith.constant 0 : i32
    %c0_i32_0 = arith.constant 0 : i32
    return %arg0, %c0_i32 : i32, i32
  }
  func.func @transform_2(%arg0: i32) -> (i32, i32) {
    %c0_i32 = arith.constant 0 : i32
    %c0_i32_0 = arith.constant 0 : i32
    return %arg0, %c0_i32 : i32, i32
  }
  func.func @transform_3(%arg0: i32) -> (i32, i32) {
    %c0_i32 = arith.constant 0 : i32
    %c0_i32_0 = arith.constant 0 : i32
    return %arg0, %c0_i32 : i32, i32
  }
  func.func @transform_4(%arg0: i32) -> (i32, i32) {
    %c0_i32 = arith.constant 0 : i32
    %c0_i32_0 = arith.constant 0 : i32
    %c0_i32_1 = arith.constant 0 : i32
    return %c0_i32, %c0_i32_0 : i32, i32
  }
  func.func @transform_5(%arg0: i32) -> (i32, i32) {
    %c0_i32 = arith.constant 0 : i32
    %c0_i32_0 = arith.constant 0 : i32
    %c0_i32_1 = arith.constant 0 : i32
    return %c0_i32, %c0_i32_0 : i32, i32
  }
  func.func @transform_6(%arg0: i32) -> (i32, i32) {
    %c0_i32 = arith.constant 0 : i32
    %c0_i32_0 = arith.constant 0 : i32
    %c0_i32_1 = arith.constant 0 : i32
    return %c0_i32, %c0_i32_0 : i32, i32
  }
  func.func @transform_7(%arg0: i32) -> (i32, i32) {
    %c0_i32 = arith.constant 0 : i32
    %c0_i32_0 = arith.constant 0 : i32
    %c0_i32_1 = arith.constant 0 : i32
    return %c0_i32, %c0_i32_0 : i32, i32
  }
  func.func @transform_8(%arg0: i32) -> (i32, i32) {
    %c0_i32 = arith.constant 0 : i32
    %c0_i32_0 = arith.constant 0 : i32
    %c0_i32_1 = arith.constant 0 : i32
    return %c0_i32, %c0_i32_0 : i32, i32
  }
  func.func @transform_9(%arg0: i32) -> (i32, i32) {
    %c0_i32 = arith.constant 0 : i32
    %c0_i32_0 = arith.constant 0 : i32
    return %arg0, %c0_i32 : i32, i32
  }
}

</mosaic_0001>

<bundles_post_ra>
// kernel: tpu_custom_call.1
= control target key start
LH: loop header
LB: loop body
LE: loop exit
PB: predicated region body
PF: predicated region fallthrough
CT: control target
= control target key end

     0   :  { %s1359_s0 = inlined_call_operand.vmem [shape: f32[16,32], index: 0, kind: input, shape index: {}]   ;;  %s1360_s1 = inlined_call_operand.hbm [shape: f32[16,32], index: 1, kind: input, shape index: {}]   ;;  %s1361_s2 = inlined_call_operand.hbm [shape: f32[16,32], index: 2, kind: input, shape index: {}]   ;;  %s1362_s3 = inlined_call_operand.vmem [shape: s32[16,1], index: 3, kind: input, shape index: {}]   ;;  %s1363_s4 = inlined_call_operand.hbm [shape: f32[32,32], index: 4, kind: input, shape index: {}]   ;;  %s1364_s5 = inlined_call_operand.hbm [shape: f32[32,32], index: 5, kind: input, shape index: {}]   ;;  %s1365_s6 = inlined_call_operand.hbm [shape: f32[32,32], index: 6, kind: input, shape index: {}]   ;;  %s1366_s7 = inlined_call_operand.vmem [shape: f32[1,32], index: 7, kind: input, shape index: {}]   ;;  %s1367_s8 = inlined_call_operand.vmem [shape: f32[2,32], index: 8, kind: input, shape index: {}]   ;;  %s1368_s9 = inlined_call_operand.hbm [shape: f32[16,32], index: 9, kind: output, shape index: {}]  }
   0x1   :  { %1374 = sst [smem:[#allocation22_spill]] %s1363_s4 }
   0x2   :  { %1375 = sst [smem:[#allocation23_spill]] %s1364_s5 }
   0x3   :  { %1376 = sst [smem:[#allocation24_spill]] %s1365_s6 }
   0x4   :  { %14 = vsyncpa [#allocation3], 0 }
   0x5   :  { %16 = vsyncpa [#allocation3 + $0x1], 0 }
   0x6   :  { %17 = vsyncpa [#allocation6], 0 }
   0x7   :  { %19 = vsyncpa [#allocation6 + $0x1], 0 }
   0x8   :  { %20 = vsyncpa [#allocation9], 0 }
   0x9   :  { %21 = vsyncpa [#allocation4], 0 }
   0xa   :  { %23 = vsyncpa [#allocation4 + $0x1], 0  ;;  %s1144_s30 = smov 0   ;;  %s1146_s10 = smov 0  }
   0xb   :  { %s1148_s11 = smov 0   ;;  %s1150_s12 = smov 0  }
   0xc LB: > { %1377 = sst [smem:[#allocation17_spill]] %s1082_s11  ;;  %s1168_s16 = sadd.s32 4294967295, %s1086_s12   ;;  %s1086_s12 = sphi %s1150_s12, %s1395_s12   ;;  %s1082_s11 = sphi %s1148_s11, %s1397_s11   ;;  %s1078_s10 = sphi %s1146_s10, %s1399_s10   ;;  %s1074_s30 = sphi %s1144_s30, %s1398_s30  }
   0xd   : > { %1378 = sst [smem:[#allocation18_spill]] %s1086_s12  ;;  %p742_p0 = scmp.ge.s32.totalorder %s1086_s12, 1 }
   0xe   : > { %s1379_s4 = sld [smem:[#allocation22_spill]]  ;;  %p76_p1 = scmp.eq.s32.totalorder %s1168_s16, 0 }
   0xf   : > { %p269_p2 = scmp.lt.s32.totalorder %s1086_s12, 3  ;;  %s1088_s18 = smov [#allocation7]  }
  0x10   : > { %s282_s19 = sshll.u32 %s1088_s18, 4  ;;  %s1381_s5 = sld [smem:[#allocation23_spill]]  ;;  %s283_s19 = int_to_ptr.vmem [resolvable:$true] %s282_s19 }
  0x11   : > { %p1173_p3 = pnand %p742_p0, %p269_p2  ;;  %s1383_s6 = sld [smem:[#allocation24_spill]] }
  0x12   : > { %s1089_s27 = smov [#allocation8]   ;;  %s1090_s29 = smov 128  }
  0x13   : > { %p785_p4 = pneg %p1173_p3  ;;  %s296_s28 = sshll.u32 %s1089_s27, 4  ;;  %s297_s28 = int_to_ptr.vmem [resolvable:$true] %s296_s28 }
  0x14   : > { %s280_s15 = sshll.u32 %s1379_s4, 4  ;;  %s1091_s13 = smov 8   ;;  %s281_s15 = int_to_ptr.hbm [resolvable:$true] %s280_s15 }
  0x15   : > { %p1185_p6 = pnand %p785_p4, %p76_p1  ;;  %s1092_s14 = smov [#allocation10]  }
  0x16   : > { %s294_s22 = sshll.u32 %s1381_s5, 4  ;;  %s310_s18 = sshll.u32 %s1092_s14, 4  ;;  %s295_s22 = int_to_ptr.hbm [resolvable:$true] %s294_s22  ;;  %s311_s18 = int_to_ptr.vmem [resolvable:$true] %s310_s18 }
  0x17   : > { %s308_s26 = sshll.u32 %s1383_s6, 4  ;;  %s741_s20 = sadd.s32 4294967294, %s1086_s12   ;;  %s309_s26 = int_to_ptr.hbm [resolvable:$true] %s308_s26 }
  0x18   : > { %788 = dma.hbm_to_vmem [thread:$0]  (!%p1185_p6), %s281_s15, 512, %s283_s19, [#allocation6], %s1090_s29, %s1090_s29, %s1091_s13  }
  0x19   : > { %791 = dma.hbm_to_vmem [thread:$0]  (!%p1185_p6), %s295_s22, 512, %s297_s28, [#allocation9], %s1090_s29, %s1090_s29, %s1091_s13  }
  0x1a   : > { %794 = dma.hbm_to_vmem [thread:$0]  (!%p1185_p6), %s309_s26, 512, %s311_s18, [#allocation9], %s1090_s29, %s1090_s29, %s1091_s13  }
  0x1b   : > { %s1200_s21 = sadd.s32 1, %s1086_s12   ;;  %s62_s24 = sadd.s32 1, %s1082_s11 }
  0x1c   : > { %1384 = sst [smem:[#allocation19_spill]] %s1200_s21  ;;  %s59_s15 = ssub.s32 %s1086_s12, %s1200_s21 }
  0x1d   : > { %p69_p7 = scmp.ne.s32.totalorder %s1082_s11, %s1078_s10  ;;  %p60_p8 = scmp.eq.s32.totalorder %s59_s15, 0 }
  0x1e   : > { %p70_p9 = scmp.eq.s32.totalorder %s1086_s12, 0  ;;  %p75_p10 = scmp.ne.s32.totalorder %s1078_s10, %s1074_s30 }
  0x1f   : > { %p256_p11 = scmp.eq.s32.totalorder %s1168_s16, 1  ;;  %p262_p2 = scmp.eq.s32.totalorder %s741_s20, 1 }
  0x20   : > { %s1212_s19 = scalar_select %p60_p8, %s1082_s11, %s62_s24  }
  0x21   : > { %p1214_p12 = por %p70_p9, %p69_p7  ;;  %p1220_p13 = por %p76_p1, %p75_p10 }
  0x22   : > { %1385 = sst [smem:[#allocation20_spill]] %s1212_s19  ;;  %p1224_p0 = por %p256_p11, %p69_p7 }
  0x23   : > { %p809_p4 = scmp.lt.s32.totalorder %s1086_s12, 2  ;;  %s337_s26 = sand.u32 1, %s1082_s11  }
  0x24   : > { %p1230_p6 = por %p262_p2, %p75_p10  ;;  %s747_s28 = sshll.u32 %s337_s26, 3 }
  0x25   : > { %s748_s29 = sshll.u32 %s1086_s12, 3  ;;  %s341_s15 = scalar_lea.vmem [#allocation2], %s747_s28 }
  0x26   : > { %s1389_s27 = scalar_select %p1230_p6, 1, 0 }
  0x27   : > { %s345_s18 = scalar_lea.hbm %s1360_s1, %s748_s29  ;;  %s349_s4 = sshll.u32 %s341_s15, 4  ;;  %s350_s4 = int_to_ptr.vmem [resolvable:$true] %s349_s4 }
  0x28   : > { %1390 = sst [smem:[#allocation21_spill]] %s1389_s27  ;;  %s347_s24 = sshll.u32 %s345_s18, 4  ;;  %s348_s24 = int_to_ptr.hbm [resolvable:$true] %s347_s24 }
  0x29   : > { %p1240_p7 = pnand %p809_p4, %p1214_p12  ;;  %s364_s19 = scalar_lea.hbm %s1361_s2, %s748_s29 }
  0x2a   : > { %s356_s11 = sand.u32 1, %s1086_s12   ;;  %s338_s21 = scalar_lea.sflag [#allocation3], %s337_s26 }
  0x2b   : > { %s948_s13 = sshra.s32 %s348_s24, 4  ;;  %p952_p9 = pneg %p1240_p7  ;;  %s949_s13 = int_to_ptr.hbm [resolvable:$true] %s948_s13 }
  0x2c   : > { %s950_s14 = scalar_lea.hbm %s949_s13, 8  ;;  %s955_s15 = scalar_lea.hbm %s1360_s1, 16 }
  0x2d   : > { %p951_p8 = scmp.ne.s32.totalorder %s949_s13, %s950_s14  ;;  %p956_p12 = scmp.lt.s32.totalorder %s949_s13, %s1360_s1 }
  0x2e   : > { %p957_p2 = scmp.lt.s32.totalorder %s955_s15, %s950_s14 }
  0x2f   : > { %p953_p10 = pnand %p952_p9, %p951_p8 }
  0x30   : > { %p958_p4 = por %p957_p2, %p956_p12 }
  0x31   : > { %p954_p11 = pneg %p953_p10 }
  0x33   : > { %p959_p5 = pnand %p958_p4, %p954_p11 }
  0x35   : > { %962 = shalt.err (!%p959_p5)
}
  0x36   : > { %798 = dma.hbm_to_vmem [thread:$0]  (!%p1240_p7), %s348_s24, 128, %s350_s4, %s338_s21  }
  0x37   : > { %s366_s26 = sshll.u32 %s364_s19, 4  ;;  %s360_s29 = scalar_lea.vmem [#allocation5], %s747_s28  ;;  %s367_s26 = int_to_ptr.hbm [resolvable:$true] %s366_s26 }
  0x38   : > { %s368_s12 = sshll.u32 %s360_s29, 4  ;;  %s357_s27 = scalar_lea.sflag [#allocation6], %s356_s11  ;;  %s369_s12 = int_to_ptr.vmem [resolvable:$true] %s368_s12 }
  0x39   : > { %s978_s22 = sshra.s32 %s367_s26, 4  ;;  %s985_s15 = scalar_lea.hbm %s1361_s2, 16  ;;  %s979_s22 = int_to_ptr.hbm [resolvable:$true] %s978_s22 }
  0x3a   : > { %s980_s18 = scalar_lea.hbm %s979_s22, 8  ;;  %p986_p5 = scmp.lt.s32.totalorder %s979_s22, %s1361_s2 }
  0x3b   : > { %p981_p8 = scmp.ne.s32.totalorder %s979_s22, %s980_s18  ;;  %p987_p11 = scmp.lt.s32.totalorder %s985_s15, %s980_s18 }
  0x3d   : > { %p983_p10 = pnand %p981_p8, %p952_p9  ;;  %p988_p2 = por %p987_p11, %p986_p5 }
  0x3f   : > { %p984_p12 = pneg %p983_p10 }
  0x41   : > { %p989_p4 = pnand %p988_p2, %p984_p12 }
  0x43   : > { %992 = shalt.err (!%p989_p4)
}
  0x44   : > { %801 = dma.hbm_to_vmem [thread:$0]  (!%p1240_p7), %s367_s26, 128, %s369_s12, %s357_s27  }
  0x45   : > { %384 = sbr.rel (%p1173_p3) target bundleno = 238 (0xee), region = 56  ;;  %s1275_s11 = sand.u32 (!%p1173_p3), 1, %s1078_s10  }
  0x46   : > { %s1278_s21 = sshll.u32 (!%p1173_p3), %s1275_s11, 3  ;;  %s387_s19 = scalar_lea.sflag (!%p1173_p3), [#allocation3], %s1275_s11 }
  0x47   : > { %s390_s28 = scalar_lea.vmem (!%p1173_p3), [#allocation2], %s1278_s21 }
  0x4a   : > { %1053 = dma.done.wait (%p1220_p13), %s387_s19, 128  }
  0x4b   : > { %1055 = vsyncadd (%p1220_p13), %s387_s19, 4294967168  ;;  %s396_s12 = sand.u32 1, %s1168_s16   ;;  %s400_s27 = scalar_lea.vmem [#allocation5], %s1278_s21 }
  0x4c   : > { %s397_s17 = scalar_lea.sflag [#allocation6], %s396_s12 }
  0x4d   : > { %1057 = dma.done.wait (%p1220_p13), %s397_s17, 128  }
  0x4e   : > { %1059 = vsyncadd (%p1220_p13), %s397_s17, 4294967168 }
  0x4f   : > { %1061 = dma.done.wait (%p76_p1), [#allocation6], 512  }
  0x50   : > { %1063 = vsyncadd (%p76_p1), [#allocation6], 4294966784 }
  0x51   : > { %1065 = dma.done.wait (%p76_p1), [#allocation9], 1024  }
  0x52   : > { %1067 = vsyncadd (%p76_p1), [#allocation9], 4294966272  ;;  %p464_p3 = scmp.lt.s32.totalorder %s1168_s16, 1  ;;  %v1093_v0 = vmov 0   ;;  %v533_v1 = vld [vmem:[#allocation10 + $0x18] sm:$0xff]  ;;  %v532_v2 = vld [vmem:[#allocation10 + $0x10] sm:$0xff] }
  0x53   : > { %852 = vset.pattern.permute.xlu0 %v1093_v0  ;;  %v481_v3 = vld [vmem:[#allocation8 + $0x18] sm:$0xff]  ;;  %549 = vmatpush.msra.mxu2 %v533_v1  ;;  %v480_v5 = vld [vmem:[#allocation8 + $0x10] sm:$0xff]  ;;  %v531_v6 = vld [vmem:[#allocation10 + $0x8] sm:$0xff]  ;;  %vm482_vm0 = vcmask 261120   ;;  %s764_s15 = sshll.u32 %s1168_s16, 3 }
  0x54   : > { %s465_s24 = scalar_select %p464_p3, %s1168_s16, 1  ;;  %498 = vmatpush.msra.mxu0 %v481_v3  ;;  %v476_v4 = vld [vmem:[#allocation7 + $0x18] sm:$0xff]  ;;  %v475_v7 = vld [vmem:[#allocation7 + $0x10] sm:$0xff]  ;;  %v530_v8 = vld [vmem:[#allocation10] sm:$0xff] }
  0x55   : > { %521 = vmatpush.msra.mxu1 %v476_v4  ;;  %550 = vmatpush.msra.mxu2 %v532_v2  ;;  %v479_v9 = vld [vmem:[#allocation8 + $0x8] sm:$0xff]  ;;  %v529_v11 = vld [vmem:[%s400_s27] sm:$0xff]  ;;  %v478_v12 = vld [vmem:[#allocation8] sm:$0xff]  ;;  %s591_s27 = scalar_lea.hbm %s1368_s9, %s764_s15  ;;  %s581_s16 = scalar_lea.sflag [#allocation4], %s1275_s11 }
  0x56   : > { %s758_s23 = sshll.u32 %s465_s24, 3  ;;  %499 = vmatpush.msra.mxu0 %v480_v5  ;;  %v474_v10 = vld [vmem:[#allocation7 + $0x8] sm:$0xff]  ;;  %v473_v13 = vld [vmem:[#allocation7] sm:$0xff]  ;;  %s463_s24 = scalar_lea.vmem [#allocation11], %s1278_s21 }
  0x57   : > { %s471_s26 = scalar_lea.vmem %s1362_s3, %s758_s23  ;;  %s467_s18 = scalar_lea.vmem %s1359_s0, %s758_s23  ;;  %522 = vmatpush.msra.mxu1 %v475_v7  ;;  %551 = vmatpush.msra.mxu2 %v531_v6  ;;  %v477_v15 = vld [vmem:[%s390_s28] sm:$0xff] }
  0x58   : > { %500 = vmatpush.msra.mxu0 %v479_v9  ;;  %v564_v14 = vld [vmem:[%s471_s26] sm:$0xff]  ;;  %s593_s23 = sshll.u32 %s463_s24, 4  ;;  %s595_s20 = sshll.u32 %s591_s27, 4  ;;  %s594_s23 = int_to_ptr.vmem [resolvable:$true] %s593_s23  ;;  %s596_s20 = int_to_ptr.hbm [resolvable:$true] %s595_s20 }
  0x59   : > { %523 = vmatpush.msra.mxu1 %v474_v10  ;;  %v472_v16 = vld [vmem:[%s467_s18] sm:$0xff]  ;;  %vm565_vm1 = vcmp.gt.s32.totalorder %v564_v14, 0  ;;  %552 = vmatpush.msra.mxu2 %v530_v8  ;;  %s1022_s6 = sshra.s32 %s596_s20, 4  ;;  %s1028_s21 = scalar_lea.hbm %s1368_s9, 16  ;;  %s1023_s6 = int_to_ptr.hbm [resolvable:$true] %s1022_s6 }
  0x5a   : > { %501 = vmatpush.msra.mxu0 %v478_v12  ;;  %v566_v17 = vsel %vm565_vm1, %v564_v14, 0  ;;  %762 = vmatmul.msk.f32.vlgmr.msra.gmra.mxu2 %vm482_vm0, %v529_v11  ;;  %v853_v22 = vld [vmem:[%s1366_s7] ss:$0 sm:$0xff]  ;;  %v854_v27 = vld [vmem:[%s1367_s8 + $0x1] ss:$0 sm:$0xff]  ;;  %s1024_s26 = scalar_lea.hbm %s1023_s6, 8  ;;  %p1029_p9 = scmp.lt.s32.totalorder %s1023_s6, %s1368_s9 }
  0x5b   : > { %524 = vmatpush.msra.mxu1 %v473_v13  ;;  %vm567_vm2 = vcmp.gt.s32.totalorder %v566_v17, 0  ;;  %760 = vmatmul.msk.f32.vlgmr.msra.gmra.mxu0 %vm482_vm0, %v477_v15  ;;  %v855_v28 = vld [vmem:[%s1367_s8] ss:$0 sm:$0xff]  ;;  %p1025_p1 = scmp.ne.s32.totalorder %s1023_s6, %s1024_s26  ;;  %p1030_p8 = scmp.lt.s32.totalorder %s1028_s21, %s1024_s26 }
  0x5c   : > { %761 = vmatmul.msk.f32.vlgmr.msra.gmra.mxu1 %vm482_vm0, %v472_v16  ;;  %v570_v18 = vsel %vm567_vm2, 1, %v1093_v0 }
  0x5d   : > { %572 = vperm.xlu0 %852, %v570_v18   ;;  %p1026_p13 = pnand %p1025_p1, %p1224_p0  ;;  %p1031_p10 = por %p1030_p8, %p1029_p9 }
  0x5f   : > { %p1027_p7 = pneg %p1026_p13 }
  0x61   : > { %p1032_p12 = pnand %p1031_p10, %p1027_p7 }
  0xcf   : > { %v573_v26 = vpop.permute.xlu0 %572 }
  0xd0   : > { %vm574_vm3 = vcmp.eq.s32.totalorder %v573_v26, 1 }
  0xd1   : > { %v577_v29 = vsel %vm574_vm3, %v854_v27, %v855_v28 }
  0xd8   : > { %v503_v19 = vpop.f32.mrf.mxu0 }
  0xd9   : > { %v526_v20 = vpop.f32.mrf.mxu1 }
  0xda   : > { %v527_v21 = vadd.f32 %v526_v20, %v503_v19 }
  0xdd   : > { %v554_v23 = vpop.f32.mrf.mxu2 }
  0xde   : > { %v557_v24 = vadd.f32 %v554_v23, %v527_v21 }
  0xe0   : > { %v562_v25 = vadd.f32 %v853_v22, %v557_v24 }
  0xe2   : > { %856 = vtanh.f32 %v562_v25 }
  0xe8   : > { %v857_v30 = vpop.eup %856 }
  0xe9   : > { %v578_v31 = vadd.f32 %v857_v30, %v577_v29 }
  0xeb   : > { %579 = vst.msk [vmem:[%s463_s24] sm:$0xff] %vm482_vm0, %v578_v31 }
  0xec   : > { %1035 = shalt.err (!%p1032_p12)
}
  0xed   : > { %783 = dma.vmem_to_hbm [thread:$0]  (%p1224_p0), %s594_s23, 128, %s596_s20, %s581_s16  }
  0xee PF: > { %s1393_s14 = sld [smem:[#allocation18_spill]]  ;;  %s607_s15 = sand.u32 1, %s1074_s30  }
  0xef   : > { %s608_s5 = scalar_lea.sflag [#allocation4], %s607_s15 }
  0xf4   : > { %p1394_p5 = scmp.ge.s32.totalorder %s1393_s14, 2 }
  0xf6   : > { %p803_p11 = pnand %p1394_p5, %p1230_p6 }
  0xf8   : > { %p804_p2 = pneg %p803_p11 }
  0xfa   : > { %1069 = dma.done.wait (%p804_p2), %s608_s5, 128  }
  0xfb   : > { %1071 = vsyncadd (%p804_p2), %s608_s5, 4294967168  ;;  %s1395_s12 = sld [smem:[#allocation19_spill]]  ;;  %s1398_s30 = smov %s1078_s10 }
  0xfc   : > { %s1396_s4 = sld [smem:[#allocation17_spill]] }
  0xfd   : > { %s1397_s11 = sld [smem:[#allocation20_spill]] }
 0x101   : > { %p26_p4 = scmp.ge.s32.totalorder %s1395_s12, 4  }
 0x102   : > { %s1399_s10 = smov %s1396_s4 }
 0x103   :  { %28 = sbr.rel (!%p26_p4) target bundleno = 12 (0xc), region = 132 }
 0x108   :  { %614 = vsyncpa [#allocation3], 1 }
 0x109   :  { %616 = vsyncpa [#allocation3 + $0x1], 1 }
 0x10a   :  { %617 = vsyncpa [#allocation6], 1 }
 0x10b   :  { %619 = vsyncpa [#allocation6 + $0x1], 1 }
 0x10c   :  { %620 = vsyncpa [#allocation9], 1 }
 0x10d   :  { %621 = vsyncpa [#allocation4], 1 }
 0x10e   :  { %623 = vsyncpa [#allocation4 + $0x1], 1 }

</bundles_post_ra>
